<compile_context>
chip_gen: v5e
topology: v5e:2x2
jax: 0.10.0
libtpu: 0.0.40
codegen_flags: <defaults>
</compile_context>

<pallas_src>
import functools

import jax
import jax.numpy as jnp
from jax import lax
from jax.experimental import pallas as pl
from jax.experimental.pallas import tpu as pltpu


MXU_DTYPE = jnp.bfloat16   # MXU operand dtype (accumulation stays f32)
_CONV_PAD = 8              # sublane-aligned causal-conv context carried across time blocks
_DECAY_CAP = 45.0          # |within-chunk cumulative log-decay| bound for factored fast path


@functools.lru_cache(maxsize=None)
def _vmem_limit_bytes():
    """Generation-aware scoped-VMEM cap (v5e/v6e: 128 MiB physical, v7x: 64 MiB)."""
    cap = 64 * 1024 * 1024                      # conservative default (v7x physical)
    try:
        info = pltpu.get_tpu_info()
        val = getattr(info, "vmem_capacity_bytes", None)
        if val:
            cap = int(val)
    except Exception:
        pass
    return min(cap * 3 // 4, 100 * 1024 * 1024)  # leave headroom for Mosaic internal scratch


# ----------------------------- small elementwise helpers (kernel-safe) -----------------------------

def _sigmoid(x):
    return 1.0 / (1.0 + jnp.exp(-x))


def _softplus(x):
    return jnp.where(x > 20.0, x, jnp.log(1.0 + jnp.exp(jnp.minimum(x, 20.0))))


def _round_up(x, m):
    return (x + m - 1) // m * m


def _pad2d(x, rows, cols):
    pr, pc = rows - x.shape[0], cols - x.shape[1]
    if pr or pc:
        x = jnp.pad(x, ((0, pr), (0, pc)))
    return x


# ----------------------------- tiled linear (x @ W, W stored bf16 as (K, N)) -----------------------------

def _matmul_kernel(x_ref, w_ref, o_ref, acc_ref):
    @pl.when(pl.program_id(2) == 0)
    def _init():
        acc_ref[...] = jnp.zeros_like(acc_ref)

    # operands are already bf16 in HBM -> no per-tile casts; f32 accumulation
    acc_ref[...] += jnp.dot(x_ref[...], w_ref[...], preferred_element_type=jnp.float32)

    @pl.when(pl.program_id(2) == pl.num_programs(2) - 1)
    def _flush():
        o_ref[...] = acc_ref[...].astype(o_ref.dtype)


def linear(x2d, w_kn, *, tm=512, tn=512, tk=1024, out_dtype=jnp.float32):
    """x2d: (M, K), w_kn: (K, N) pre-transposed bf16 weight -> (M, N) out_dtype."""
    if x2d.dtype != MXU_DTYPE:
        x2d = x2d.astype(MXU_DTYPE)
    if w_kn.dtype != MXU_DTYPE:
        w_kn = w_kn.astype(MXU_DTYPE)
    M, K = x2d.shape
    K2, N = w_kn.shape
    assert K == K2
    tm_ = M if M <= tm else tm
    tk_ = K if K <= tk else tk
    tn_ = N if N <= tn else tn
    Mp, Kp, Np = _round_up(M, tm_), _round_up(K, tk_), _round_up(N, tn_)
    xp = _pad2d(x2d, Mp, Kp)          # no-op (no HBM copy) when already tile-aligned
    wp = _pad2d(w_kn, Kp, Np)

    out = pl.pallas_call(
        _matmul_kernel,
        out_shape=jax.ShapeDtypeStruct((Mp, Np), out_dtype),
        grid=(Mp // tm_, Np // tn_, Kp // tk_),
        in_specs=[pl.BlockSpec((tm_, tk_), lambda i, j, k: (i, k)),
                  pl.BlockSpec((tk_, tn_), lambda i, j, k: (k, j))],
        out_specs=pl.BlockSpec((tm_, tn_), lambda i, j, k: (i, j)),
        scratch_shapes=[pltpu.VMEM((tm_, tn_), jnp.float32)],
        compiler_params=pltpu.CompilerParams(
            dimension_semantics=("parallel", "parallel", "arbitrary"),
            vmem_limit_bytes=_vmem_limit_bytes()),
    )(xp, wp)
    if (Mp, Np) != (M, N):
        out = out[:M, :N]
    return out


# ----------------------------- row-tiled ungated RMSNorm (emits bf16) -----------------------------

def _rmsnorm_kernel(x_ref, w_ref, o_ref, *, eps):
    x = x_ref[...]
    var = jnp.mean(x * x, axis=-1, keepdims=True)
    o_ref[...] = (x * lax.rsqrt(var + eps) * w_ref[...]).astype(o_ref.dtype)


def _pick_row_tile(M):
    for t in (1024, 512, 256, 128, 64, 32, 16, 8):
        if M % t == 0:
            return t
    return M


def rmsnorm(x2d, w, eps=1e-5, out_dtype=MXU_DTYPE):
    """Ungated RMSNorm over last dim; x2d: (M, D) f32, w: (D,) -> (M, D) bf16."""
    M, D = x2d.shape
    tm = _pick_row_tile(M)
    # TODO(synk): optionally fuse the residual add into this kernel to save one HBM read.
    return pl.pallas_call(
        functools.partial(_rmsnorm_kernel, eps=eps),
        out_shape=jax.ShapeDtypeStruct((M, D), out_dtype),
        grid=(M // tm,),
        in_specs=[pl.BlockSpec((tm, D), lambda i: (i, 0)),
                  pl.BlockSpec((1, D), lambda i: (0, 0))],
        out_specs=pl.BlockSpec((tm, D), lambda i: (i, 0)),
        compiler_params=pltpu.CompilerParams(
            dimension_semantics=("parallel",),
            vmem_limit_bytes=_vmem_limit_bytes()),
    )(x2d, w.reshape(1, D))


# ----------------------------- Mamba2Block core kernel (one chunk per grid step) -----------------------------
# Fuses: z/xBC/dt split, depthwise causal conv1d (+bias, SiLU) with carried context, dt softplus,
# one SSD chunk (head-independent parts batched over heads on the MXU), D skip, gated RMSNorm.
# Persistent scratch carries only the SSM state and the conv context between time steps.

def _mamba_chunk_kernel(zxbcdt_ref, convw_ref, convb_ref, dtb_ref, alog_ref,
                        dwide_ref, normw_ref, o_ref,
                        xpad_sc, tail_sc, state_sc, ydiag_sc, *,
                        d_inner, d_state, n_heads, d_conv, eps):
    L = o_ref.shape[1]
    N = d_state
    H = n_heads
    dh = d_inner // H
    conv_dim = d_inner + 2 * N
    PAD = _CONV_PAD

    t_idx = pl.program_id(1)

    # reset the carried state + conv context at the start of every sequence
    @pl.when(t_idx == 0)
    def _reset():
        state_sc[...] = jnp.zeros_like(state_sc)
        tail_sc[...] = jnp.zeros_like(tail_sc)

    slab = zxbcdt_ref[0]                                  # (L, 2*d_inner + 2*N + H), f32
    z = slab[:, :d_inner]
    xbc_raw = slab[:, d_inner:d_inner + conv_dim]
    dt_raw = slab[:, d_inner + conv_dim:]

    # ---- depthwise causal conv1d + bias + SiLU (left context carried across blocks) ----
    xpad_sc[0:PAD, :] = tail_sc[...]
    xpad_sc[PAD:, :] = xbc_raw
    tail_sc[...] = xbc_raw[L - PAD:, :]                   # context for the next time block
    xp = xpad_sc[...]
    convw = convw_ref[...]                                # (d_conv, conv_dim)
    acc = jnp.zeros((L, conv_dim), jnp.float32) + convb_ref[...]
    for k in range(d_conv):
        s = d_conv - 1 - k                                # right shift of input for this tap
        acc = acc + convw[k:k + 1, :] * xp[PAD - s:PAD - s + L, :]
    xbc = acc * _sigmoid(acc)                             # SiLU

    x_c = xbc[:, :d_inner]                                # (L, d_inner)
    B_c = xbc[:, d_inner:d_inner + N]                     # (L, N)
    C_c = xbc[:, d_inner + N:]                            # (L, N)

    # head -> channel 0/1 expansion matrix (exact in bf16)
    h_iota = lax.broadcasted_iota(jnp.int32, (H, d_inner), 0)
    c_iota = lax.broadcasted_iota(jnp.int32, (H, d_inner), 1)
    E = (c_iota // dh == h_iota).astype(MXU_DTYPE)

    def expand(v_lh):                                     # (l, H) -> (l, d_inner)
        return jnp.dot(v_lh.astype(MXU_DTYPE), E, preferred_element_type=jnp.float32)

    dt_sp = _softplus(dt_raw + dtb_ref[...])              # (L, H)
    dA = (-jnp.exp(alog_ref[...])) * dt_sp                # (L, H), all <= 0
    xdt = x_c * expand(dt_sp)                             # x * dt, (L, d_inner)

    # ---- in-chunk cumulative sums (kept f32: they feed exp) ----
    row = lax.broadcasted_iota(jnp.int32, (L, L), 0)
    col = lax.broadcasted_iota(jnp.int32, (L, L), 1)
    tril_b = row >= col
    tril_f = tril_b.astype(jnp.float32)
    cs = jnp.dot(tril_f, dA, preferred_element_type=jnp.float32)   # inclusive cumsum, (L, H)
    cs_last = cs[L - 1:L, :]                                        # (1, H)

    decay_out = expand(jnp.exp(cs))                        # (L, d_inner), values in (0, 1]

    # head-independent C @ B^T, masked to the lower triangle
    CB = lax.dot_general(C_c.astype(MXU_DTYPE), B_c.astype(MXU_DTYPE),
                         (((1,), (1,)), ((), ())),
                         preferred_element_type=jnp.float32)        # (L, L)
    CBm = tril_f * CB

    # ---- intra-chunk (diagonal-block) contribution ----
    cs_min = jnp.min(cs)

    @pl.when(cs_min > -_DECAY_CAP)
    def _fast():
        # factored 1-semiseparable form exp(cs_i - cs_j) = exp(cs_i)*exp(-cs_j):
        # ~2*H*L transcendentals and a single full-width MXU matmul for all heads.
        u = xdt * expand(jnp.exp(-cs))
        ydiag_sc[...] = decay_out * jnp.dot(CBm.astype(MXU_DTYPE), u.astype(MXU_DTYPE),
                                            preferred_element_type=jnp.float32)

    @pl.when(cs_min <= -_DECAY_CAP)
    def _exact():
        # numerically exact fallback (difference form) when the chunk decays too hard for the
        # factored form; per-head results stream straight into scratch (no list/concatenate).
        cs_rows = lax.dot_general(dA, tril_f, (((0,), (1,)), ((), ())),
                                  preferred_element_type=jnp.float32)   # (H, L)
        for h in range(H):
            Lmat = jnp.where(tril_b, jnp.exp(cs[:, h:h + 1] - cs_rows[h:h + 1, :]), 0.0)
            ydiag_sc[:, h * dh:(h + 1) * dh] = jnp.dot(
                (CB * Lmat).astype(MXU_DTYPE),
                xdt[:, h * dh:(h + 1) * dh].astype(MXU_DTYPE),
                preferred_element_type=jnp.float32)

    # ---- inter-chunk (carried-state) contribution + state update ----
    state = state_sc[...]                                               # (N, d_inner)
    y_off = decay_out * jnp.dot(C_c.astype(MXU_DTYPE), state.astype(MXU_DTYPE),
                                preferred_element_type=jnp.float32)
    decay_states = expand(jnp.exp(cs_last - cs))                        # (L, d_inner), (0, 1]
    chunk_state = lax.dot_general(B_c.astype(MXU_DTYPE),
                                  (xdt * decay_states).astype(MXU_DTYPE),
                                  (((0,), (0,)), ((), ())),
                                  preferred_element_type=jnp.float32)   # (N, d_inner)
    state_sc[...] = state * expand(jnp.exp(cs_last)) + chunk_state

    # ---- D skip + gated RMSNorm (y * silu(z), then RMS * weight), lane-dense store ----
    y = ydiag_sc[...] + y_off + x_c * dwide_ref[...]
    y = y * (z * _sigmoid(z))
    var = jnp.mean(y * y, axis=-1, keepdims=True)
    o_ref[0] = (y * lax.rsqrt(var + eps) * normw_ref[...]).astype(o_ref.dtype)


def mamba2_block_forward(u, p, cfg):
    """u: (B, S, d_model) activations -> (B, S, d_model). Matches Mamba2Block.forward."""
    B, S, E_ = u.shape
    L = cfg['chunk_size']
    d_inner, d_state = cfg['d_inner'], cfg['d_state']
    H, d_conv = cfg['n_heads'], cfg['d_conv']
    conv_dim = d_inner + 2 * d_state
    d_full = 2 * d_inner + 2 * d_state + H
    assert d_conv - 1 <= _CONV_PAD, "kernel assumes d_conv - 1 <= 8"
    assert L % 8 == 0 and L >= _CONV_PAD, "chunk_size must be a multiple of 8"
    assert d_inner % H == 0

    # output-equivalent to the reference F.pad (its extra full chunk when S % L == 0 only
    # produces rows that are sliced away afterwards)
    pad = (-S) % L
    if pad:
        u = jnp.pad(u, ((0, 0), (0, pad), (0, 0)))
    T = S + pad
    n_t = T // L

    zxbcdt = linear(u.reshape(B * T, E_), p['in_proj_w']).reshape(B, T, d_full)

    kern = functools.partial(_mamba_chunk_kernel, d_inner=d_inner, d_state=d_state,
                             n_heads=H, d_conv=d_conv, eps=1e-5)

    # TODO(synk): add a head-group "parallel" grid axis so v7x's second TensorCore is busy for
    #             B=1 prefill, and process several chunks per grid step (or pl.Buffered(3) on
    #             zxbcdt) when chunk_size is small and the per-step DMA / overhead is exposed.
    y_norm = pl.pallas_call(
        kern,
        out_shape=jax.ShapeDtypeStruct((B, T, d_inner), MXU_DTYPE),
        grid=(B, n_t),
        in_specs=[
            pl.BlockSpec((1, L, d_full), lambda b, t: (b, t, 0)),       # one chunk of zxbcdt
            pl.BlockSpec((d_conv, conv_dim), lambda b, t: (0, 0)),
            pl.BlockSpec((1, conv_dim), lambda b, t: (0, 0)),
            pl.BlockSpec((1, H), lambda b, t: (0, 0)),
            pl.BlockSpec((1, H), lambda b, t: (0, 0)),
            pl.BlockSpec((1, d_inner), lambda b, t: (0, 0)),
            pl.BlockSpec((1, d_inner), lambda b, t: (0, 0)),
        ],
        out_specs=pl.BlockSpec((1, L, d_inner), lambda b, t: (b, t, 0)),
        scratch_shapes=[
            pltpu.VMEM((L + _CONV_PAD, conv_dim), jnp.float32),  # conv input (block + context)
            pltpu.VMEM((_CONV_PAD, conv_dim), jnp.float32),      # carried raw-conv context
            pltpu.VMEM((d_state, d_inner), jnp.float32),         # carried SSM state
            pltpu.VMEM((L, d_inner), jnp.float32),               # per-chunk Y_diag staging
        ],
        compiler_params=pltpu.CompilerParams(
            dimension_semantics=("parallel", "arbitrary"),       # batch parallel, time serial
            vmem_limit_bytes=_vmem_limit_bytes()),
    )(zxbcdt, p['conv_w'], p['conv_b'], p['dt_bias'], p['A_log'],
      p['D_wide'], p['norm_w'])

    y = linear(y_norm.reshape(B * T, d_inner), p['out_proj_w']).reshape(B, T, E_)
    return y[:, :S] if pad else y


# ----------------------------- Mamba2 top-level forward -----------------------------

def mamba2_forward(tokens, params, cfg):
    B, S = tokens.shape
    E = cfg['emb_dim']
    x = jnp.take(params['emb_w'], tokens, axis=0)                 # embedding lookup (glue), f32
    for lp in params['layers']:
        xn = rmsnorm(x.reshape(B * S, E), lp['norm_w']).reshape(B, S, E)   # bf16 activations
        y_f = mamba2_block_forward(xn, lp['mixer'], cfg)
        x = x + y_f                                               # bidirectional=False
    xn = rmsnorm(x.reshape(B * S, E), params['norm_f_w'])
    logits = linear(xn, params['out_proj_w']).reshape(B, S, -1)
    return logits[:, :S]


# ----------------------------- deterministic parameter init -----------------------------
# Layout precomputed at init: projection weights pre-transposed to (in, out) and stored bf16,
# conv weight as (d_conv, conv_dim), D repeated per channel, vectors as (1, D).

def init_params(key, cfg):
    E, V, O = cfg['emb_dim'], cfg['input_dim'], cfg['output_dim']
    d_inner, d_state = cfg['d_inner'], cfg['d_state']
    H, d_conv = cfg['n_heads'], cfg['d_conv']
    conv_dim = d_inner + 2 * d_state
    d_in_proj = 2 * d_inner + 2 * d_state + H
    dh = d_inner // H

    def xavier(k, shape):                  # (out, in), PyTorch convention
        b = (6.0 / (shape[0] + shape[1])) ** 0.5
        return jax.random.uniform(k, shape, jnp.float32, -b, b)

    def kaiming(k, shape, fan_in):
        b = (6.0 / fan_in) ** 0.5
        return jax.random.uniform(k, shape, jnp.float32, -b, b)

    key, k_emb, k_out = jax.random.split(key, 3)
    layers = []
    for _ in range(cfg['n_layers']):
        key, k0, k1, k2, k3, k4, k5 = jax.random.split(key, 7)
        layers.append(dict(
            norm_w=jnp.ones((E,), jnp.float32),
            mixer=dict(
                in_proj_w=kaiming(k0, (d_in_proj, E), E).T.astype(MXU_DTYPE),   # (E, d_in_proj)
                out_proj_w=xavier(k5, (E, d_inner)).T.astype(MXU_DTYPE),        # (d_inner, E)
                conv_w=kaiming(k1, (conv_dim, d_conv), d_conv).T,               # (d_conv, conv_dim)
                conv_b=jnp.zeros((1, conv_dim), jnp.float32),
                dt_bias=jax.random.uniform(k2, (1, H), jnp.float32, -0.5, 0.5),
                A_log=jax.random.uniform(k3, (1, H), jnp.float32, -0.1, -0.01),
                D_wide=jnp.repeat(jax.random.uniform(k4, (H,), jnp.float32, 0.9, 1.1),
                                  dh).reshape(1, d_inner),
                norm_w=jnp.ones((1, d_inner), jnp.float32),
            ),
        ))
    return dict(
        emb_w=xavier(k_emb, (V, E)),
        layers=layers,
        norm_f_w=jnp.ones((E,), jnp.float32),
        out_proj_w=xavier(k_out, (O, E)).T.astype(MXU_DTYPE),                   # (E, O)
    )


if __name__ == "__main__":
    cfg = dict(emb_dim=32, input_dim=16, output_dim=16, n_layers=1, n_heads=4,
               d_state=32, d_conv=4, expand=2, chunk_size=8)
    cfg['d_inner'] = cfg['expand'] * cfg['emb_dim']     # 64; d_head = 16, conv_dim = 128

    key = jax.random.PRNGKey(0)
    pkey, tkey = jax.random.split(key)
    params = init_params(pkey, cfg)

    batch, seq_len = 2, 8
    tokens = jax.random.randint(tkey, (batch, seq_len), 0, cfg['input_dim'], dtype=jnp.int32)

    logits = mamba2_forward(tokens, params, cfg)
    logits = jax.block_until_ready(logits)

    assert logits.shape == (batch, seq_len, cfg['output_dim']), logits.shape
    assert bool(jnp.all(jnp.isfinite(logits)))
    print("KERNEL_OK")
</pallas_src>

<mosaic_0001>
module attributes {stable_mosaic.version = 11 : i64} {
  func.func @_rmsnorm_kernel(%arg0: i32, %arg1: memref<16x32xf32, #tpu.memory_space<vmem>>, %arg2: memref<1x32xf32, #tpu.memory_space<vmem>>, %arg3: memref<16x32xbf16, #tpu.memory_space<vmem>>) attributes {dimension_semantics = [#tpu.dimension_semantics<parallel>], iteration_bounds = array<i64: 1>, scalar_prefetch = 0 : i64, scratch_operands = 0 : i64, tpu.core_type = #tpu.core_type<tc>, window_params = [{transform_indices = @transform_0, window_bounds = array<i64: 16, 32>}, {pipeline_mode = #tpu.pipeline_mode<synchronous>, transform_indices = @transform_1, window_bounds = array<i64: 1, 32>}, {transform_indices = @transform_2, window_bounds = array<i64: 16, 32>}]} {
    %c0 = arith.constant 0 : index
    %c0_0 = arith.constant 0 : index
    %0 = vector.load %arg1[%c0, %c0_0] : memref<16x32xf32, #tpu.memory_space<vmem>>, vector<16x32xf32>
    %1 = arith.mulf %0, %0 : vector<16x32xf32>
    %cst = arith.constant dense<0.000000e+00> : vector<16xf32>
    %2 = vector.multi_reduction <add>, %1, %cst [1] : vector<16x32xf32> to vector<16xf32>
    %3 = vector.shape_cast %2 : vector<16xf32> to vector<16x1xf32>
    %cst_1 = arith.constant 3.200000e+01 : f32
    %4 = vector.broadcast %cst_1 : f32 to vector<16x1xf32>
    %5 = arith.divf %3, %4 : vector<16x1xf32>
    %cst_2 = arith.constant 9.99999974E-6 : f32
    %6 = vector.broadcast %cst_2 : f32 to vector<16x1xf32>
    %7 = arith.addf %5, %6 : vector<16x1xf32>
    %8 = math.rsqrt %7 : vector<16x1xf32>
    %9 = vector.broadcast %8 : vector<16x1xf32> to vector<16x32xf32>
    %10 = arith.mulf %0, %9 : vector<16x32xf32>
    %c0_3 = arith.constant 0 : index
    %c0_4 = arith.constant 0 : index
    %11 = vector.load %arg2[%c0_3, %c0_4] : memref<1x32xf32, #tpu.memory_space<vmem>>, vector<1x32xf32>
    %12 = vector.broadcast %11 : vector<1x32xf32> to vector<16x32xf32>
    %13 = arith.mulf %10, %12 : vector<16x32xf32>
    %14 = arith.truncf %13 : vector<16x32xf32> to vector<16x32xbf16>
    %c0_5 = arith.constant 0 : index
    %c0_6 = arith.constant 0 : index
    %15 = vector.load %arg3[%c0_5, %c0_6] : memref<16x32xbf16, #tpu.memory_space<vmem>>, vector<16x32xbf16>
    tpu.vector_store %arg3[%c0_5, %c0_6], %14 {strides = array<i32>} : memref<16x32xbf16, #tpu.memory_space<vmem>>, vector<16x32xbf16>,
    return
  }
  func.func @transform_0(%arg0: i32) -> (i32, i32) {
    %c0_i32 = arith.constant 0 : i32
    %c0_i32_0 = arith.constant 0 : i32
    return %arg0, %c0_i32 : i32, i32
  }
  func.func @transform_1(%arg0: i32) -> (i32, i32) {
    %c0_i32 = arith.constant 0 : i32
    %c0_i32_0 = arith.constant 0 : i32
    %c0_i32_1 = arith.constant 0 : i32
    return %c0_i32, %c0_i32_0 : i32, i32
  }
  func.func @transform_2(%arg0: i32) -> (i32, i32) {
    %c0_i32 = arith.constant 0 : i32
    %c0_i32_0 = arith.constant 0 : i32
    return %arg0, %c0_i32 : i32, i32
  }
}

</mosaic_0001>

<bundles_post_ra>
// kernel: tpu_custom_call.1
= control target key start
LH: loop header
LB: loop body
LE: loop exit
PB: predicated region body
PF: predicated region fallthrough
CT: control target
= control target key end

     0   :  { %7 = vsyncpa [#allocation3], 0  ;;  %s242_s0 = inlined_call_operand.hbm [shape: f32[16,32], index: 0, kind: input, shape index: {}]   ;;  %s243_s1 = inlined_call_operand.hbm [shape: f32[1,32], index: 1, kind: input, shape index: {}]   ;;  %s244_s2 = inlined_call_operand.hbm [shape: bf16[16,32], index: 2, kind: output, shape index: {}]  }
   0x1   :  { %8 = vsyncpa [#allocation6], 0 }
   0x2   :  { %9 = vsyncpa [#allocation4], 0  ;;  %s14_s11 = sshll.u32 %s242_s0, 4  ;;  %s210_s12 = smov [#allocation2]   ;;  %s15_s11 = int_to_ptr.hbm [resolvable:$true] %s14_s11 }
   0x3   :  { %s16_s13 = sshll.u32 %s210_s12, 4  ;;  %s28_s16 = sshll.u32 %s243_s1, 4  ;;  %s17_s13 = int_to_ptr.vmem [resolvable:$true] %s16_s13  ;;  %s29_s16 = int_to_ptr.hbm [resolvable:$true] %s28_s16 }
   0x4   :  { %s211_s17 = smov 128   ;;  %s212_s18 = smov 8  }
   0x5   :  { %22 = dma.hbm_to_vmem [thread:$0]  %s15_s11, 256, %s17_s13, [#allocation3], %s211_s17, %s211_s17, %s212_s18  }
   0x6   :  { %s213_s19 = smov [#allocation5]  }
   0x7   :  { %s30_s20 = sshll.u32 %s213_s19, 4  ;;  %s31_s20 = int_to_ptr.vmem [resolvable:$true] %s30_s20 }
   0x8   :  { %33 = dma.hbm_to_vmem [thread:$0]  %s29_s16, 16, %s31_s20, [#allocation6]  }
   0x9   :  { %204 = dma.done.wait [#allocation3], 256  }
   0xa   :  { %205 = vsyncadd [#allocation3], 4294967040 }
   0xb   :  { %206 = dma.done.wait [#allocation6], 16  }
   0xc   :  { %207 = vsyncadd [#allocation6], 4294967280  ;;  %v42_v0 = vld [vmem:[#allocation2] sm:$0xff]  ;;  %vm46_vm0 = vcmask 261120   ;;  %v43_v2 = vld [vmem:[#allocation2 + $0x8] sm:$0xff]  ;;  %v214_v6 = vmov 32.0  }
   0xd   :  { %v44_v1 = vmul.f32 %v42_v0, %v42_v0  ;;  %v45_v4 = vmul.f32 %v43_v2, %v43_v2  ;;  %126 = vrcp.f32 %v214_v6  ;;  %v125_v27 = vld [vmem:[#allocation5] ss:$0 sm:$0xff]  ;;  %vm94_vm6 = vcmask 257024   ;;  %s215_s0 = smov [#allocation7]   ;;  %s103_s23 = sshll.u32 %s244_s2, 4  ;;  %s104_s23 = int_to_ptr.hbm [resolvable:$true] %s103_s23 }
   0xe   :  { %s101_s1 = sshll.u32 %s215_s0, 4  ;;  %s216_s24 = smov 64   ;;  %s102_s1 = int_to_ptr.vmem [resolvable:$true] %s101_s1 }
   0xf   :  { %v47_v3 = vsel %vm46_vm0, %v44_v1, 0.0  ;;  %v50_v5 = vsel %vm46_vm0, %v45_v4, 0.0  ;;  %s217_s25 = smov 4  }
  0x10   :  { %48 = vadd.xlane.f32.xlu0 %v47_v3 }
  0x13   :  { %v127_v7 = vpop.eup %126 }
  0x14   :  { %v54_v8 = vmul.f32 32.0, %v127_v7  ;;  %vm58_vm1 = vweird.f32 %v127_v7 }
  0x16   :  { %v55_v9 = vsub.f32 1.0, %v54_v8 }
  0x18   :  { %51 = vadd.xlane.f32.xlu0 %v50_v5  ;;  %v56_v10 = vmul.f32 %v127_v7, %v55_v9 }
  0x1a   :  { %v57_v11 = vadd.f32 %v127_v7, %v56_v10 }
  0x1c   :  { %v59_v12 = vsel %vm58_vm1, %v127_v7, %v57_v11 }
  0x83   :  { %v49_v13 = vpop.xlane.xlu0 %48 }
  0x84   :  { %v60_v14 = vmul.f32 %v59_v12, %v49_v13 }
  0x86   :  { %v62_v15 = vadd.f32 1e-05, %v60_v14 }
  0x88   :  { %128 = vrsqrt.f32 %v62_v15  ;;  %vm70_vm3 = vweird.f32 %v62_v15 }
  0x8b   :  { %v52_v16 = vpop.xlane.xlu0 %51 }
  0x8c   :  { %v61_v17 = vmul.f32 %v59_v12, %v52_v16 }
  0x8e   :  { %v129_v18 = vpop.eup %128  ;;  %v63_v19 = vadd.f32 1e-05, %v61_v17 }
  0x8f   :  { %v65_v20 = vmul.f32 %v129_v18, %v62_v15  ;;  %vm71_vm2 = vweird.f32 %v129_v18 }
  0x90   :  { %130 = vrsqrt.f32 %v63_v19  ;;  %vm72_vm4 = vmor %vm70_vm3, %vm71_vm2  ;;  %vm80_vm7 = vweird.f32 %v63_v19 }
  0x91   :  { %v66_v21 = vmul.f32 %v129_v18, %v65_v20 }
  0x93   :  { %v67_v22 = vmul.f32 0.5, %v66_v21 }
  0x95   :  { %v68_v23 = vsub.f32 1.5, %v67_v22 }
  0x96   :  { %v131_v24 = vpop.eup %130 }
  0x97   :  { %v69_v25 = vmul.f32 %v129_v18, %v68_v23  ;;  %v75_v26 = vmul.f32 %v131_v24, %v63_v19  ;;  %vm81_vm5 = vweird.f32 %v131_v24 }
  0x98   :  { %vm82_vm8 = vmor %vm80_vm7, %vm81_vm5 }
  0x99   :  { %v73_v28 = vsel %vm72_vm4, %v129_v18, %v69_v25  ;;  %v76_v29 = vmul.f32 %v131_v24, %v75_v26 }
  0x9a   :  { %v84_v30 = vmul.f32 %v73_v28, %v42_v0 }
  0x9b   :  { %v77_v31 = vmul.f32 0.5, %v76_v29 }
  0x9c   :  { %v90_v32 = vmul.f32 %v125_v27, %v84_v30 }
  0x9d   :  { %v78_v33 = vsub.f32 1.5, %v77_v31 }
  0x9e   :  { %v92_v34 = vpack.c.bf16 %v90_v32, %v90_v32 }
  0x9f   :  { %v79_v35 = vmul.f32 %v131_v24, %v78_v33 }
  0xa0   :  { %95 = vst.msk [vmem:[#allocation7] sm:$0xf] %vm94_vm6, %v92_v34 }
  0xa1   :  { %v83_v36 = vsel %vm82_vm8, %v131_v24, %v79_v35 }
  0xa2   :  { %v85_v37 = vmul.f32 %v83_v36, %v43_v2 }
  0xa4   :  { %v91_v38 = vmul.f32 %v125_v27, %v85_v37 }
  0xa6   :  { %v93_v39 = vpack.c.bf16 %v91_v38, %v91_v38 }
  0xa8   :  { %96 = vst.msk [vmem:[#allocation7 + $0x4] sm:$0xf] %vm94_vm6, %v93_v39 }
  0xa9   :  { %109 = dma.vmem_to_hbm [thread:$0]  %s102_s1, 128, %s104_s23, [#allocation4], %s216_s24, %s216_s24, %s217_s25  }
  0xaa   :  { %208 = dma.done.wait [#allocation4], 128  }
  0xab   :  { %209 = vsyncadd [#allocation4], 4294967168 }
  0xac   :  { %114 = vsyncpa [#allocation3], 1 }
  0xad   :  { %115 = vsyncpa [#allocation6], 1 }
  0xae   :  { %116 = vsyncpa [#allocation4], 1 }

</bundles_post_ra>
